<compile_context>
chip_gen: v6e
topology: v6e:2x2x1
jax: 0.10.0
libtpu: 0.0.40
codegen_flags: <defaults>
</compile_context>

<pallas_src>
from functools import partial

import jax
import jax.numpy as jnp
import numpy as np
from jax.experimental import pallas as pl
from jax.experimental.pallas import tpu as pltpu


def self_attention_kernel(x_ref, mask_ref, wq_ref, wk_ref, wv_ref,
                          wlin_ref, blin_ref, gamma_ref, beta_ref, o_ref,
                          *, nh, hd, eps, mm_dtype):
    Bblk, S, H = x_ref.shape
    R = Bblk * S          # rows in this block
    NB = nh * Bblk        # batched-matmul batch size for attention

    x3 = x_ref[...]                               # (Bblk, S, H), original dtype
    x2 = x3.reshape(R, H)
    x_mm = x2.astype(mm_dtype)

    # ---- head-batched Q/K/V projections (no lane slicing of a fused output;
    # ---- 1/sqrt(H) temperature already folded into Wq on the host) ---------
    xb = jnp.broadcast_to(x_mm[None, :, :], (nh, R, H))      # hoisted, reused 3x
    q = jnp.einsum('hrc,hcd->hrd', xb, wq_ref[...],
                   preferred_element_type=jnp.float32)       # (nh, R, hd) f32
    k = jnp.einsum('hrc,hcd->hrd', xb, wk_ref[...],
                   preferred_element_type=jnp.float32)
    v = jnp.einsum('hrc,hcd->hrd', xb, wv_ref[...],
                   preferred_element_type=jnp.float32)

    # ---- batched attention over (head, batch); leading-dim regroups only ---
    qb = q.reshape(NB, S, hd).astype(mm_dtype)
    kb = k.reshape(NB, S, hd).astype(mm_dtype)
    vb = v.reshape(NB, S, hd).astype(mm_dtype)

    s = jnp.einsum('bqd,bkd->bqk', qb, kb,
                   preferred_element_type=jnp.float32)       # (NB, S, S) f32
    # NOTE: attention-score masking intentionally dropped — the (S,1) query-row
    # mask only changes rows that are zeroed by `lin * mask` below.
    s = s - jnp.max(s, axis=-1, keepdims=True)
    p = jnp.exp(s)
    p = p * pl.reciprocal(jnp.sum(p, axis=-1, keepdims=True), approx=True)

    ctx = jnp.einsum('bqk,bkd->bqd', p.astype(mm_dtype), vb,
                     preferred_element_type=jnp.float32)     # (NB, S, hd) f32

    # ---- output linear fused with the head-concat: per-head partial products
    # ---- summed over heads into a lane-dense (R, H) accumulator ------------
    ctx_h = ctx.reshape(nh, R, hd).astype(mm_dtype)
    lin_h = jnp.einsum('hrd,hdo->hro', ctx_h, wlin_ref[...],
                       preferred_element_type=jnp.float32)   # (nh, R, H)
    lin = jnp.sum(lin_h, axis=0) + blin_ref[...]             # (R, H) f32

    # ---- mask, highway residual (original-precision x), LayerNorm ----------
    lin3 = lin.reshape(Bblk, S, H)
    hw = lin3 * mask_ref[...] + x3.astype(jnp.float32)       # (Bblk, S, H)
    mu = jnp.mean(hw, axis=-1, keepdims=True)
    diff = hw - mu
    # torch.std is unbiased (divide by H-1); eps is added to sigma, not var.
    sigma = jnp.sqrt(jnp.sum(diff * diff, axis=-1, keepdims=True) * (1.0 / (H - 1)))
    inv = pl.reciprocal(sigma + eps, approx=True)
    ln = diff * inv * gamma_ref[...] + beta_ref[...]

    o_ref[...] = ln.astype(o_ref.dtype)


def _default_block_b(B, S, H, nh, mm_itemsize,
                     vmem_budget_bytes=40 * 1024 * 1024, min_grid_steps=4):
    """Largest block_b (divisor of B) whose in-kernel footprint fits the VMEM
    budget, preferring >= min_grid_steps grid steps so each v7x TensorCore has
    at least two steps to pipeline.  On single-core v5e/v6e, pass block_b
    explicitly (as large as VMEM allows) to amortize per-step overhead."""
    per_b = 4 * S * (nh * H        # broadcast x for head-batched projections
                     + 3 * H       # q, k, v
                     + 2 * nh * S  # scores + probs
                     + H           # ctx
                     + nh * H      # per-head lin partials
                     + 2 * H)      # hw / LN temporaries
    per_b += 4 * S * H * (mm_itemsize + 4)     # double-buffered x in + out blocks
    cap = max(1, int(vmem_budget_bytes // max(per_b, 1)))
    target = min(cap, max(1, B // min_grid_steps))
    target = max(1, min(target, B))
    while B % target:
        target -= 1
    return target


def self_attention(x, mask, wq, wk, wv, wlin, blin, gamma, beta,
                   eps=1e-3, block_b=None, matmul_dtype=None,
                   vmem_limit_bytes=48 * 1024 * 1024):
    B, S, H = x.shape
    nh, Hw, hd = wq.shape
    assert Hw == H and nh * hd == H
    # The in-kernel score-mask elision is only valid for a per-query-row
    # (B, S, 1) mask (as in the reference module).  Key / full masks are NOT
    # supported by this kernel.
    assert mask.shape == (B, S, 1), "mask must be a (B, S, 1) query-row mask"

    out_dtype = x.dtype
    mm_dtype = jnp.dtype(matmul_dtype) if matmul_dtype is not None else jnp.dtype(x.dtype)
    mm_itemsize = mm_dtype.itemsize

    if block_b is None:
        block_b = _default_block_b(B, S, H, nh, mm_itemsize)
    assert B % block_b == 0
    grid_b = B // block_b

    # Per-head weights stay (nh, H, hd); fold the 1/sqrt(hidden_dim) temperature
    # into Wq.  nn.Linear weight is (out, in); concat column i = h*hd + d, so
    # W^T grouped by head gives the per-head (hd, H) slabs for the fused
    # concat+linear.
    inv_temper = 1.0 / np.sqrt(H)
    wq_h = (jnp.asarray(wq) * inv_temper).astype(mm_dtype)        # (nh, H, hd)
    wk_h = jnp.asarray(wk).astype(mm_dtype)
    wv_h = jnp.asarray(wv).astype(mm_dtype)
    wlin_h = jnp.asarray(wlin).T.reshape(nh, hd, H).astype(mm_dtype)  # (nh, hd, H)

    mask_f = jnp.asarray(mask).astype(jnp.float32)
    blin2 = jnp.asarray(blin).reshape(1, H).astype(jnp.float32)
    gamma2 = jnp.asarray(gamma).reshape(1, H).astype(jnp.float32)
    beta2 = jnp.asarray(beta).reshape(1, H).astype(jnp.float32)

    # Advisory cost estimate so XLA schedules surrounding ops sensibly.
    flops = int(8 * B * S * H * H + 4 * B * S * S * H)
    transcendentals = int(B * nh * S * S)
    bytes_accessed = int(
        B * S * H * x.dtype.itemsize                      # x
        + B * S * 4                                       # mask
        + 4 * H * H * mm_itemsize                         # wq/wk/wv/wlin
        + 3 * H * 4                                       # bias, gamma, beta
        + B * S * H * jnp.dtype(out_dtype).itemsize)      # output

    kernel = partial(self_attention_kernel, nh=nh, hd=hd, eps=eps, mm_dtype=mm_dtype)
    return pl.pallas_call(
        kernel,
        out_shape=jax.ShapeDtypeStruct((B, S, H), out_dtype),
        grid=(grid_b,),
        in_specs=[
            pl.BlockSpec((block_b, S, H), lambda i: (i, 0, 0)),   # x (orig dtype)
            pl.BlockSpec((block_b, S, 1), lambda i: (i, 0, 0)),   # query-row mask
            pl.BlockSpec((nh, H, hd), lambda i: (0, 0, 0)),       # Wq (temper folded)
            pl.BlockSpec((nh, H, hd), lambda i: (0, 0, 0)),       # Wk
            pl.BlockSpec((nh, H, hd), lambda i: (0, 0, 0)),       # Wv
            pl.BlockSpec((nh, hd, H), lambda i: (0, 0, 0)),       # W_linear^T per head
            pl.BlockSpec((1, H), lambda i: (0, 0)),               # b_linear
            pl.BlockSpec((1, H), lambda i: (0, 0)),               # gamma (a_2)
            pl.BlockSpec((1, H), lambda i: (0, 0)),               # beta  (b_2)
        ],
        out_specs=pl.BlockSpec((block_b, S, H), lambda i: (i, 0, 0)),
        compiler_params=pltpu.CompilerParams(
            dimension_semantics=("parallel",),
            vmem_limit_bytes=int(vmem_limit_bytes)),
        cost_estimate=pl.CostEstimate(flops=flops,
                                      transcendentals=transcendentals,
                                      bytes_accessed=bytes_accessed),
    )(x, mask_f, wq_h, wk_h, wv_h, wlin_h, blin2, gamma2, beta2)


def self_attention_ref(x, mask, wq, wk, wv, wlin, blin, gamma, beta, eps=1e-3):
    """Plain-JAX reference mirroring the PyTorch forward (incl. attn masking)."""
    B, S, H = x.shape
    nh, _, hd = wq.shape
    inv_temper = 1.0 / np.sqrt(H)
    heads = []
    for h in range(nh):
        q = x @ wq[h]                                    # (B, S, hd)
        k = x @ wk[h]
        v = x @ wv[h]
        attn = jnp.einsum("bqd,bkd->bqk", q, k) * inv_temper
        attn = jnp.where(mask == 0.0, -1e10, attn)       # (B,S,1) bcast over keys
        attn = jax.nn.softmax(attn, axis=-1)
        heads.append(jnp.einsum("bqk,bkd->bqd", attn, v))
    concat = jnp.concatenate(heads, axis=-1)             # (B, S, H)
    lin = concat @ wlin.T + blin[0]
    hw = lin * mask + x
    mu = jnp.mean(hw, axis=-1, keepdims=True)
    sigma = jnp.sqrt(jnp.sum((hw - mu) ** 2, axis=-1, keepdims=True) / (H - 1))
    return (hw - mu) / (sigma + eps) * gamma[0] + beta[0]


if __name__ == "__main__":
    B, S, H, NH = 2, 8, 32, 4
    HD = H // NH

    key = jax.random.PRNGKey(0)
    kx, kq, kk, kv, kw, kb = jax.random.split(key, 6)

    x = jax.random.normal(kx, (B, S, H), dtype=jnp.float32)

    # 0/1 mask of shape (B, S, 1): first 6 / 5 positions valid.
    lens = np.array([6, 5])
    mask_np = (np.arange(S)[None, :] < lens[:, None]).astype(np.float32)[..., None]
    mask = jnp.asarray(mask_np)

    # Deterministic "xavier-normal"-style init for per-head projections.
    xav_std = float(np.sqrt(2.0 / (H * HD + NH * HD)))
    wq = jax.random.normal(kq, (NH, H, HD), dtype=jnp.float32) * xav_std
    wk = jax.random.normal(kk, (NH, H, HD), dtype=jnp.float32) * xav_std
    wv = jax.random.normal(kv, (NH, H, HD), dtype=jnp.float32) * xav_std

    # nn.Linear(H, H): weight (out, in), bias; uniform(-1/sqrt(H), 1/sqrt(H)).
    bound = 1.0 / np.sqrt(H)
    wlin = jax.random.uniform(kw, (H, H), jnp.float32, -bound, bound)
    blin = jax.random.uniform(kb, (1, H), jnp.float32, -bound, bound)

    gamma = jnp.ones((1, H), dtype=jnp.float32)   # a_2
    beta = jnp.zeros((1, H), dtype=jnp.float32)   # b_2

    ref = self_attention_ref(x, mask, wq, wk, wv, wlin, blin, gamma, beta)

    # f32 matmul path (default).
    out = jax.block_until_ready(
        self_attention(x, mask, wq, wk, wv, wlin, blin, gamma, beta))
    np.testing.assert_allclose(np.asarray(out), np.asarray(ref),
                               rtol=5e-3, atol=5e-3)

    # bf16 MXU path: all matmuls in bf16 with f32 accumulation; softmax,
    # residual (original f32 x) and LayerNorm stay f32.
    out_bf16 = jax.block_until_ready(
        self_attention(x, mask, wq, wk, wv, wlin, blin, gamma, beta,
                       matmul_dtype=jnp.bfloat16))
    np.testing.assert_allclose(np.asarray(out_bf16), np.asarray(ref),
                               rtol=5e-2, atol=5e-2)

    print("KERNEL_OK")
</pallas_src>

<mosaic_0001>
module attributes {stable_mosaic.version = 11 : i64} {
  func.func @self_attention_kernel(%arg0: i32, %arg1: memref<1x8x32xf32, #tpu.memory_space<vmem>>, %arg2: memref<1x8x1xf32, #tpu.memory_space<vmem>>, %arg3: memref<4x32x8xf32, #tpu.memory_space<vmem>>, %arg4: memref<4x32x8xf32, #tpu.memory_space<vmem>>, %arg5: memref<4x32x8xf32, #tpu.memory_space<vmem>>, %arg6: memref<4x8x32xf32, #tpu.memory_space<vmem>>, %arg7: memref<1x32xf32, #tpu.memory_space<vmem>>, %arg8: memref<1x32xf32, #tpu.memory_space<vmem>>, %arg9: memref<1x32xf32, #tpu.memory_space<vmem>>, %arg10: memref<1x8x32xf32, #tpu.memory_space<vmem>>) attributes {dimension_semantics = [#tpu.dimension_semantics<parallel>], iteration_bounds = array<i64: 2>, scalar_prefetch = 0 : i64, scratch_operands = 0 : i64, tpu.core_type = #tpu.core_type<tc>, window_params = [{transform_indices = @transform_0, window_bounds = array<i64: 1, 8, 32>}, {transform_indices = @transform_1, window_bounds = array<i64: 1, 8, 1>}, {pipeline_mode = #tpu.pipeline_mode<synchronous>, transform_indices = @transform_2, window_bounds = array<i64: 4, 32, 8>}, {pipeline_mode = #tpu.pipeline_mode<synchronous>, transform_indices = @transform_3, window_bounds = array<i64: 4, 32, 8>}, {pipeline_mode = #tpu.pipeline_mode<synchronous>, transform_indices = @transform_4, window_bounds = array<i64: 4, 32, 8>}, {pipeline_mode = #tpu.pipeline_mode<synchronous>, transform_indices = @transform_5, window_bounds = array<i64: 4, 8, 32>}, {pipeline_mode = #tpu.pipeline_mode<synchronous>, transform_indices = @transform_6, window_bounds = array<i64: 1, 32>}, {pipeline_mode = #tpu.pipeline_mode<synchronous>, transform_indices = @transform_7, window_bounds = array<i64: 1, 32>}, {pipeline_mode = #tpu.pipeline_mode<synchronous>, transform_indices = @transform_8, window_bounds = array<i64: 1, 32>}, {transform_indices = @transform_9, window_bounds = array<i64: 1, 8, 32>}]} {
    %c0 = arith.constant 0 : index
    %c0_0 = arith.constant 0 : index
    %c0_1 = arith.constant 0 : index
    %0 = vector.load %arg1[%c0, %c0_0, %c0_1] : memref<1x8x32xf32, #tpu.memory_space<vmem>>, vector<1x8x32xf32>
    %1 = vector.shape_cast %0 : vector<1x8x32xf32> to vector<8x32xf32>
    %2 = vector.shape_cast %1 : vector<8x32xf32> to vector<1x8x32xf32>
    %3 = vector.shape_cast %2 : vector<1x8x32xf32> to vector<1x8x32xf32>
    %4 = vector.broadcast %3 : vector<1x8x32xf32> to vector<4x8x32xf32>
    %c0_2 = arith.constant 0 : index
    %c0_3 = arith.constant 0 : index
    %c0_4 = arith.constant 0 : index
    %5 = vector.load %arg3[%c0_2, %c0_3, %c0_4] : memref<4x32x8xf32, #tpu.memory_space<vmem>>, vector<4x32x8xf32>
    "tpu.trace_start"() <{level = 10 : i32, message = "hrc,hcd->hrd"}> : () -> ()
    %cst = arith.constant dense<0.000000e+00> : vector<4x8x8xf32>
    %6 = tpu.matmul %4, %5, %cst {dimension_numbers = #tpu.dot_dimension_numbers<[2], [1], [1], [2], [0, 0, 0, 1, 1, 2], [0], [0]>} : vector<4x8x32xf32>, vector<4x32x8xf32>, vector<4x8x8xf32> -> vector<4x8x8xf32>
    "tpu.trace_stop"() : () -> ()
    %c0_5 = arith.constant 0 : index
    %c0_6 = arith.constant 0 : index
    %c0_7 = arith.constant 0 : index
    %7 = vector.load %arg4[%c0_5, %c0_6, %c0_7] : memref<4x32x8xf32, #tpu.memory_space<vmem>>, vector<4x32x8xf32>
    "tpu.trace_start"() <{level = 10 : i32, message = "hrc,hcd->hrd"}> : () -> ()
    %cst_8 = arith.constant dense<0.000000e+00> : vector<4x8x8xf32>
    %8 = tpu.matmul %4, %7, %cst_8 {dimension_numbers = #tpu.dot_dimension_numbers<[2], [1], [1], [2], [0, 0, 0, 1, 1, 2], [0], [0]>} : vector<4x8x32xf32>, vector<4x32x8xf32>, vector<4x8x8xf32> -> vector<4x8x8xf32>
    "tpu.trace_stop"() : () -> ()
    %c0_9 = arith.constant 0 : index
    %c0_10 = arith.constant 0 : index
    %c0_11 = arith.constant 0 : index
    %9 = vector.load %arg5[%c0_9, %c0_10, %c0_11] : memref<4x32x8xf32, #tpu.memory_space<vmem>>, vector<4x32x8xf32>
    "tpu.trace_start"() <{level = 10 : i32, message = "hrc,hcd->hrd"}> : () -> ()
    %cst_12 = arith.constant dense<0.000000e+00> : vector<4x8x8xf32>
    %10 = tpu.matmul %4, %9, %cst_12 {dimension_numbers = #tpu.dot_dimension_numbers<[2], [1], [1], [2], [0, 0, 0, 1, 1, 2], [0], [0]>} : vector<4x8x32xf32>, vector<4x32x8xf32>, vector<4x8x8xf32> -> vector<4x8x8xf32>
    "tpu.trace_stop"() : () -> ()
    "tpu.trace_start"() <{level = 10 : i32, message = "bqd,bkd->bqk"}> : () -> ()
    %cst_13 = arith.constant dense<0.000000e+00> : vector<4x8x8xf32>
    %11 = tpu.matmul %6, %8, %cst_13 {dimension_numbers = #tpu.dot_dimension_numbers<[2], [2], [1], [1], [0, 0, 0, 1, 1, 1], [0], [0]>} : vector<4x8x8xf32>, vector<4x8x8xf32>, vector<4x8x8xf32> -> vector<4x8x8xf32>
    "tpu.trace_stop"() : () -> ()
    %cst_14 = arith.constant dense<0xFF800000> : vector<4x8xf32>
    %12 = vector.multi_reduction <maximumf>, %11, %cst_14 [2] : vector<4x8x8xf32> to vector<4x8xf32>
    %13 = vector.shape_cast %12 : vector<4x8xf32> to vector<4x8x1xf32>
    %14 = vector.broadcast %13 : vector<4x8x1xf32> to vector<4x8x8xf32>
    %15 = arith.subf %11, %14 : vector<4x8x8xf32>
    %16 = math.exp %15 : vector<4x8x8xf32>
    %cst_15 = arith.constant dense<0.000000e+00> : vector<4x8xf32>
    %17 = vector.multi_reduction <add>, %16, %cst_15 [2] : vector<4x8x8xf32> to vector<4x8xf32>
    %18 = vector.shape_cast %17 : vector<4x8xf32> to vector<4x8x1xf32>
    %19 = tpu.reciprocal %18 {approx = true} : vector<4x8x1xf32> -> vector<4x8x1xf32>
    %20 = vector.broadcast %19 : vector<4x8x1xf32> to vector<4x8x8xf32>
    %21 = arith.mulf %16, %20 : vector<4x8x8xf32>
    "tpu.trace_start"() <{level = 10 : i32, message = "bqk,bkd->bqd"}> : () -> ()
    %cst_16 = arith.constant dense<0.000000e+00> : vector<4x8x8xf32>
    %22 = tpu.matmul %21, %10, %cst_16 {dimension_numbers = #tpu.dot_dimension_numbers<[2], [1], [1], [2], [0, 0, 0, 1, 1, 2], [0], [0]>} : vector<4x8x8xf32>, vector<4x8x8xf32>, vector<4x8x8xf32> -> vector<4x8x8xf32>
    "tpu.trace_stop"() : () -> ()
    %c0_17 = arith.constant 0 : index
    %c0_18 = arith.constant 0 : index
    %c0_19 = arith.constant 0 : index
    %23 = vector.load %arg6[%c0_17, %c0_18, %c0_19] : memref<4x8x32xf32, #tpu.memory_space<vmem>>, vector<4x8x32xf32>
    "tpu.trace_start"() <{level = 10 : i32, message = "hrd,hdo->hro"}> : () -> ()
    %cst_20 = arith.constant dense<0.000000e+00> : vector<4x8x32xf32>
    %24 = tpu.matmul %22, %23, %cst_20 {dimension_numbers = #tpu.dot_dimension_numbers<[2], [1], [1], [2], [0, 0, 0, 1, 1, 2], [0], [0]>} : vector<4x8x8xf32>, vector<4x8x32xf32>, vector<4x8x32xf32> -> vector<4x8x32xf32>
    "tpu.trace_stop"() : () -> ()
    %cst_21 = arith.constant dense<0.000000e+00> : vector<8x32xf32>
    %25 = vector.multi_reduction <add>, %24, %cst_21 [0] : vector<4x8x32xf32> to vector<8x32xf32>
    %c0_22 = arith.constant 0 : index
    %c0_23 = arith.constant 0 : index
    %26 = vector.load %arg7[%c0_22, %c0_23] : memref<1x32xf32, #tpu.memory_space<vmem>>, vector<1x32xf32>
    %27 = vector.broadcast %26 : vector<1x32xf32> to vector<8x32xf32>
    %28 = arith.addf %25, %27 : vector<8x32xf32>
    %29 = vector.shape_cast %28 : vector<8x32xf32> to vector<1x8x32xf32>
    %c0_24 = arith.constant 0 : index
    %c0_25 = arith.constant 0 : index
    %c0_26 = arith.constant 0 : index
    %30 = vector.load %arg2[%c0_24, %c0_25, %c0_26] : memref<1x8x1xf32, #tpu.memory_space<vmem>>, vector<1x8x1xf32>
    %31 = vector.broadcast %30 : vector<1x8x1xf32> to vector<1x8x32xf32>
    %32 = arith.mulf %29, %31 : vector<1x8x32xf32>
    %33 = arith.addf %32, %0 : vector<1x8x32xf32>
    %cst_27 = arith.constant dense<0.000000e+00> : vector<1x8xf32>
    %34 = vector.multi_reduction <add>, %33, %cst_27 [2] : vector<1x8x32xf32> to vector<1x8xf32>
    %35 = vector.shape_cast %34 : vector<1x8xf32> to vector<1x8x1xf32>
    %cst_28 = arith.constant 3.200000e+01 : f32
    %36 = vector.broadcast %cst_28 : f32 to vector<1x8x1xf32>
    %37 = arith.divf %35, %36 : vector<1x8x1xf32>
    %38 = vector.broadcast %37 : vector<1x8x1xf32> to vector<1x8x32xf32>
    %39 = arith.subf %33, %38 : vector<1x8x32xf32>
    %40 = arith.mulf %39, %39 : vector<1x8x32xf32>
    %cst_29 = arith.constant dense<0.000000e+00> : vector<1x8xf32>
    %41 = vector.multi_reduction <add>, %40, %cst_29 [2] : vector<1x8x32xf32> to vector<1x8xf32>
    %42 = vector.shape_cast %41 : vector<1x8xf32> to vector<1x8x1xf32>
    %cst_30 = arith.constant 0.0322580636 : f32
    %43 = vector.broadcast %cst_30 : f32 to vector<1x8x1xf32>
    %44 = arith.mulf %42, %43 : vector<1x8x1xf32>
    %45 = math.sqrt %44 : vector<1x8x1xf32>
    %cst_31 = arith.constant 1.000000e-03 : f32
    %46 = vector.broadcast %cst_31 : f32 to vector<1x8x1xf32>
    %47 = arith.addf %45, %46 : vector<1x8x1xf32>
    %48 = tpu.reciprocal %47 {approx = true} : vector<1x8x1xf32> -> vector<1x8x1xf32>
    %49 = vector.broadcast %48 : vector<1x8x1xf32> to vector<1x8x32xf32>
    %50 = arith.mulf %39, %49 : vector<1x8x32xf32>
    %c0_32 = arith.constant 0 : index
    %c0_33 = arith.constant 0 : index
    %51 = vector.load %arg8[%c0_32, %c0_33] : memref<1x32xf32, #tpu.memory_space<vmem>>, vector<1x32xf32>
    %52 = vector.shape_cast %51 : vector<1x32xf32> to vector<1x1x32xf32>
    %53 = vector.broadcast %52 : vector<1x1x32xf32> to vector<1x8x32xf32>
    %54 = arith.mulf %50, %53 : vector<1x8x32xf32>
    %c0_34 = arith.constant 0 : index
    %c0_35 = arith.constant 0 : index
    %55 = vector.load %arg9[%c0_34, %c0_35] : memref<1x32xf32, #tpu.memory_space<vmem>>, vector<1x32xf32>
    %56 = vector.shape_cast %55 : vector<1x32xf32> to vector<1x1x32xf32>
    %57 = vector.broadcast %56 : vector<1x1x32xf32> to vector<1x8x32xf32>
    %58 = arith.addf %54, %57 : vector<1x8x32xf32>
    %c0_36 = arith.constant 0 : index
    %c0_37 = arith.constant 0 : index
    %c0_38 = arith.constant 0 : index
    %59 = vector.load %arg10[%c0_36, %c0_37, %c0_38] : memref<1x8x32xf32, #tpu.memory_space<vmem>>, vector<1x8x32xf32>
    tpu.vector_store %arg10[%c0_36, %c0_37, %c0_38], %58 {strides = array<i32>} : memref<1x8x32xf32, #tpu.memory_space<vmem>>, vector<1x8x32xf32>,
    return
  }
  func.func @transform_0(%arg0: i32) -> (i32, i32, i32) {
    %c0_i32 = arith.constant 0 : i32
    %c0_i32_0 = arith.constant 0 : i32
    %c0_i32_1 = arith.constant 0 : i32
    return %arg0, %c0_i32, %c0_i32_0 : i32, i32, i32
  }
  func.func @transform_1(%arg0: i32) -> (i32, i32, i32) {
    %c0_i32 = arith.constant 0 : i32
    %c0_i32_0 = arith.constant 0 : i32
    %c0_i32_1 = arith.constant 0 : i32
    return %arg0, %c0_i32, %c0_i32_0 : i32, i32, i32
  }
  func.func @transform_2(%arg0: i32) -> (i32, i32, i32) {
    %c0_i32 = arith.constant 0 : i32
    %c0_i32_0 = arith.constant 0 : i32
    %c0_i32_1 = arith.constant 0 : i32
    %c0_i32_2 = arith.constant 0 : i32
    return %c0_i32, %c0_i32_0, %c0_i32_1 : i32, i32, i32
  }
  func.func @transform_3(%arg0: i32) -> (i32, i32, i32) {
    %c0_i32 = arith.constant 0 : i32
    %c0_i32_0 = arith.constant 0 : i32
    %c0_i32_1 = arith.constant 0 : i32
    %c0_i32_2 = arith.constant 0 : i32
    return %c0_i32, %c0_i32_0, %c0_i32_1 : i32, i32, i32
  }
  func.func @transform_4(%arg0: i32) -> (i32, i32, i32) {
    %c0_i32 = arith.constant 0 : i32
    %c0_i32_0 = arith.constant 0 : i32
    %c0_i32_1 = arith.constant 0 : i32
    %c0_i32_2 = arith.constant 0 : i32
    return %c0_i32, %c0_i32_0, %c0_i32_1 : i32, i32, i32
  }
  func.func @transform_5(%arg0: i32) -> (i32, i32, i32) {
    %c0_i32 = arith.constant 0 : i32
    %c0_i32_0 = arith.constant 0 : i32
    %c0_i32_1 = arith.constant 0 : i32
    %c0_i32_2 = arith.constant 0 : i32
    return %c0_i32, %c0_i32_0, %c0_i32_1 : i32, i32, i32
  }
  func.func @transform_6(%arg0: i32) -> (i32, i32) {
    %c0_i32 = arith.constant 0 : i32
    %c0_i32_0 = arith.constant 0 : i32
    %c0_i32_1 = arith.constant 0 : i32
    return %c0_i32, %c0_i32_0 : i32, i32
  }
  func.func @transform_7(%arg0: i32) -> (i32, i32) {
    %c0_i32 = arith.constant 0 : i32
    %c0_i32_0 = arith.constant 0 : i32
    %c0_i32_1 = arith.constant 0 : i32
    return %c0_i32, %c0_i32_0 : i32, i32
  }
  func.func @transform_8(%arg0: i32) -> (i32, i32) {
    %c0_i32 = arith.constant 0 : i32
    %c0_i32_0 = arith.constant 0 : i32
    %c0_i32_1 = arith.constant 0 : i32
    return %c0_i32, %c0_i32_0 : i32, i32
  }
  func.func @transform_9(%arg0: i32) -> (i32, i32, i32) {
    %c0_i32 = arith.constant 0 : i32
    %c0_i32_0 = arith.constant 0 : i32
    %c0_i32_1 = arith.constant 0 : i32
    return %arg0, %c0_i32, %c0_i32_0 : i32, i32, i32
  }
}

</mosaic_0001>

<bundles_post_ra>
// kernel: tpu_custom_call.1
= control target key start
LH: loop header
LB: loop body
LE: loop exit
PB: predicated region body
PF: predicated region fallthrough
CT: control target
= control target key end

     0   :  { %s3249_s0 = inlined_call_operand.vmem [shape: f32[2,8,32], index: 0, kind: input, shape index: {}]   ;;  %s3250_s1 = inlined_call_operand.vmem [shape: f32[2,8,1], index: 1, kind: input, shape index: {}]   ;;  %s3251_s2 = inlined_call_operand.vmem [shape: f32[4,32,8], index: 2, kind: input, shape index: {}]   ;;  %s3252_s3 = inlined_call_operand.vmem [shape: f32[4,32,8], index: 3, kind: input, shape index: {}]   ;;  %s3253_s4 = inlined_call_operand.vmem [shape: f32[4,32,8], index: 4, kind: input, shape index: {}]   ;;  %s3254_s5 = inlined_call_operand.vmem [shape: f32[4,8,32], index: 5, kind: input, shape index: {}]   ;;  %s3255_s6 = inlined_call_operand.vmem [shape: f32[1,32], index: 6, kind: input, shape index: {}]   ;;  %s3256_s7 = inlined_call_operand.vmem [shape: f32[1,32], index: 7, kind: input, shape index: {}]   ;;  %s3257_s8 = inlined_call_operand.vmem [shape: f32[1,32], index: 8, kind: input, shape index: {}]   ;;  %s3258_s9 = inlined_call_operand.hbm [shape: f32[2,8,32], index: 9, kind: output, shape index: {}]  }
   0x1   :  { %3259 = sst [smem:[#allocation5_spill]] %s3249_s0 }
   0x2   :  { %14 = vsyncpa [#allocation3], 0 }
   0x3   :  { %16 = vsyncpa [#allocation3 + $0x1], 0  ;;  %s2818_s30 = smov 0   ;;  %s2820_s10 = smov 0  }
   0x4   :  { %s2822_s11 = smov 0   ;;  %s2824_s12 = smov 0  }
   0x5 LB: > { %s2839_s13 = sadd.s32 4294967295, %s2762_s12   ;;  %s2321_s14 = sadd.s32 4294967294, %s2762_s12   ;;  %s2762_s12 = sphi %s2824_s12, %s3266_s12   ;;  %s2758_s11 = sphi %s2822_s11, %s3265_s11   ;;  %s2754_s10 = sphi %s2820_s10, %s3264_s10   ;;  %s2750_s30 = sphi %s2818_s30, %s3263_s30  }
   0x6   : > { %s2843_s15 = sadd.s32 1, %s2762_s12   ;;  %s228_s16 = sadd.s32 1, %s2758_s11 }
   0x7   : > { %s225_s17 = ssub.s32 %s2762_s12, %s2843_s15  ;;  %p238_p0 = scmp.ne.s32.totalorder %s2758_s11, %s2754_s10 }
   0x8   : > { %p226_p1 = scmp.eq.s32.totalorder %s225_s17, 0  ;;  %p239_p2 = scmp.eq.s32.totalorder %s2839_s13, 1 }
   0x9   : > { %p244_p3 = scmp.ne.s32.totalorder %s2754_s10, %s2750_s30  ;;  %p245_p4 = scmp.eq.s32.totalorder %s2321_s14, 1 }
   0xa   : > { %s2854_s18 = scalar_select %p226_p1, %s2758_s11, %s228_s16  }
   0xb   : > { %p2856_p5 = por %p239_p2, %p238_p0  ;;  %p2860_p6 = por %p245_p4, %p244_p3 }
   0xc   : > { %p2324_p7 = scmp.ge.s32.totalorder %s2762_s12, 1  ;;  %p298_p8 = scmp.lt.s32.totalorder %s2762_s12, 3 }
   0xe   : > { %p299_p9 = pnand %p2324_p7, %p298_p8 }
   0xf   : > { %p337_p10 = scmp.lt.s32.totalorder (!%p299_p9), %s2839_s13, 1  ;;  %s3262_s0 = sld [smem:[#allocation5_spill]] (!%p299_p9) }
  0x10   : > { %302 = sbr.rel (%p299_p9) target bundleno = 1500 (0x5dc), region = 56  ;;  %s334_s17 = sand.u32 (!%p299_p9), 1, %s2754_s10  }
  0x11   : > { %s2325_s21 = sshll.u32 (!%p299_p9), %s334_s17, 3  ;;  %s2767_s24 = smov (!%p299_p9), [#allocation2]  }
  0x12   : > { %s336_s28 = scalar_lea.vmem (!%p299_p9), [#allocation2], %s2325_s21  ;;  %s2706_s25 = sshll.u32 (!%p299_p9), %s2767_s24, 4  ;;  %s2707_s25 = int_to_ptr.vmem [resolvable:$false] %s2706_s25 }
  0x15   : > { %v349_v0 = vld [vmem:[%s3251_s2 + $0x18] sm:$0xff]  ;;  %v2764_v2 = vmov 0.0   ;;  %v348_v3 = vld [vmem:[%s3251_s2 + $0x10] sm:$0xff]  ;;  %s2882_s29 = scalar_select %p337_p10, %s2839_s13, 1  ;;  %v347_v5 = vld [vmem:[%s3251_s2 + $0x8] sm:$0xff]  ;;  %vm362_vm0 = vcmask 261120  }
  0x16   : > { %v353_v1 = vld [vmem:[%s3251_s2 + $0x38] sm:$0xff]  ;;  %2447 = vmatprep.subr.mxu0 %v2764_v2  ;;  %2458 = vmatprep.subr.mxu1 %v2764_v2  ;;  %v352_v4 = vld [vmem:[%s3251_s2 + $0x30] sm:$0xff]  ;;  %v351_v6 = vld [vmem:[%s3251_s2 + $0x28] sm:$0xff]  ;;  %vm2765_vm1 = vmmov 0   ;;  %vm1238_vm2 = vcmask 64512  }
  0x17   : > { %2448 = vmatpush3.msra.mxu0 %v349_v0  ;;  %2459 = vmatpush3.msra.mxu1 %v353_v1  ;;  %s2326_s22 = sshll.u32 %s2882_s29, 3  ;;  %v346_v7 = vld [vmem:[%s3251_s2] sm:$0xff]  ;;  %v357_v10 = vld [vmem:[%s3251_s2 + $0x58] sm:$0xff]  ;;  %v356_v12 = vld [vmem:[%s3251_s2 + $0x50] sm:$0xff]  ;;  %s2250_s29 = sshll.u32 %s336_s28, 4  ;;  %s2251_s29 = int_to_ptr.vmem [resolvable:$true] %s2250_s29 }
  0x18   : > { %2449 = vmatprep.subr.mxu0 %v2764_v2  ;;  %2460 = vmatprep.subr.mxu1 %v2764_v2  ;;  %s340_s27 = scalar_lea.vmem %s3262_s0, %s2326_s22  ;;  %v350_v8 = vld [vmem:[%s3251_s2 + $0x20] sm:$0xff]  ;;  %v361_v11 = vld [vmem:[%s3251_s2 + $0x78] sm:$0xff]  ;;  %v360_v13 = vld [vmem:[%s3251_s2 + $0x70] sm:$0xff]  ;;  %s344_s26 = scalar_lea.vmem %s3250_s1, %s2326_s22 }
  0x19   : > { %2450 = vmatpush3.msra.mxu0 %v348_v3  ;;  %2461 = vmatpush3.msra.mxu1 %v352_v4  ;;  %v2906_v9 = vld [vmem:[%s340_s27] sm:$0xff]  ;;  %v355_v14 = vld [vmem:[%s3251_s2 + $0x48] sm:$0xff]  ;;  %v649_v18 = vld [vmem:[%s3252_s3 + $0x18] sm:$0xff]  ;;  %s2360_s27 = sshll.u32 %s2839_s13, 7  ;;  %s2237_s0 = scalar_lea.sflag [#allocation3], %s334_s17 }
  0x1a   : > { %2451 = vmatprep.subr.mxu0 %v2764_v2  ;;  %2462 = vmatprep.subr.mxu1 %v2764_v2  ;;  %v359_v15 = vld [vmem:[%s3251_s2 + $0x68] sm:$0xff]  ;;  %v354_v16 = vld [vmem:[%s3251_s2 + $0x40] sm:$0xff]  ;;  %v653_v19 = vld [vmem:[%s3252_s3 + $0x38] sm:$0xff]  ;;  %s2248_s16 = scalar_lea.hbm %s3258_s9, %s2360_s27  ;;  %s2702_s23 = scalar_lea.vmem %s2251_s29, 128 }
  0x1b   : > { %2452 = vmatpush3.msra.mxu0 %v347_v5  ;;  %2463 = vmatpush3.msra.mxu1 %v351_v6  ;;  %v358_v17 = vld [vmem:[%s3251_s2 + $0x60] sm:$0xff]  ;;  %v648_v20 = vld [vmem:[%s3252_s3 + $0x10] sm:$0xff]  ;;  %v647_v22 = vld [vmem:[%s3252_s3 + $0x8] sm:$0xff]  ;;  %p2703_p11 = scmp.ne.s32.totalorder %s2251_s29, %s2702_s23  ;;  %s2708_s13 = scalar_lea.vmem %s2707_s25, 256 }
  0x1c   : > { %2453 = vmatprep.subr.mxu0 %v2764_v2  ;;  %2464 = vmatprep.subr.mxu1 %v2764_v2  ;;  %v652_v21 = vld [vmem:[%s3252_s3 + $0x30] sm:$0xff]  ;;  %v651_v23 = vld [vmem:[%s3252_s3 + $0x28] sm:$0xff]  ;;  %v646_v24 = vld [vmem:[%s3252_s3] sm:$0xff]  ;;  %p2709_p0 = scmp.lt.s32.totalorder %s2251_s29, %s2707_s25  ;;  %p2710_p1 = scmp.lt.s32.totalorder %s2708_s13, %s2702_s23 }
  0x1d   : > { %2454 = vmatpush3.msra.mxu0 %v346_v7  ;;  %2455 = vmatprep.mubr.msk.f32.mxu0 %vm2765_vm1, %v2764_v2  ;;  %v650_v25 = vld [vmem:[%s3252_s3 + $0x20] sm:$0xff]  ;;  %v657_v26 = vld [vmem:[%s3252_s3 + $0x58] sm:$0xff]  ;;  %v656_v28 = vld [vmem:[%s3252_s3 + $0x50] sm:$0xff]  ;;  %p2704_p12 = pnand %p2703_p11, %p2856_p5 }
  0x1e   : > { %2465 = vmatpush3.msra.mxu1 %v350_v8  ;;  %2456 = vmatmul.mubr.msk.f32.vlgmr.msra.gmra.mxu0 %vm362_vm0, %v2906_v9  ;;  %v661_v27 = vld [vmem:[%s3252_s3 + $0x78] sm:$0xff]  ;;  %v660_v29 = vld [vmem:[%s3252_s3 + $0x70] sm:$0xff]  ;;  %v655_v30 = vld [vmem:[%s3252_s3 + $0x48] sm:$0xff]  ;;  %p2711_p2 = por %p2710_p1, %p2709_p0 }
  0x1f   : > { %2466 = vmatprep.mubr.msk.f32.mxu1 %vm2765_vm1, %v2764_v2  ;;  %2469 = vmatprep.subr.mxu0 %v2764_v2  ;;  %v659_v31 = vld [vmem:[%s3252_s3 + $0x68] sm:$0xff]  ;;  %v654_v32 = vld [vmem:[%s3252_s3 + $0x40] sm:$0xff]  ;;  %v945_v34 = vld [vmem:[%s3253_s4 + $0x18] sm:$0xff]  ;;  %p2705_p13 = pneg %p2704_p12 }
  0x20   : > { %2480 = vmatprep.subr.mxu1 %v2764_v2  ;;  %2467 = vmatmul.mubr.msk.f32.vlgmr.msra.gmra.mxu1 %vm362_vm0, %v2906_v9  ;;  %v658_v33 = vld [vmem:[%s3252_s3 + $0x60] sm:$0xff]  ;;  %v949_v35 = vld [vmem:[%s3253_s4 + $0x38] sm:$0xff]  ;;  %v944_v36 = vld [vmem:[%s3253_s4 + $0x10] sm:$0xff] }
  0x21   : > { %2470 = vmatpush3.msra.mxu0 %v357_v10  ;;  %2481 = vmatpush3.msra.mxu1 %v361_v11  ;;  %v948_v37 = vld [vmem:[%s3253_s4 + $0x30] sm:$0xff]  ;;  %v943_v38 = vld [vmem:[%s3253_s4 + $0x8] sm:$0xff]  ;;  %v942_v40 = vld [vmem:[%s3253_s4] sm:$0xff]  ;;  %p2712_p3 = pnand %p2711_p2, %p2705_p13 }
  0x22   : > { %2471 = vmatprep.subr.mxu0 %v2764_v2  ;;  %2482 = vmatprep.subr.mxu1 %v2764_v2  ;;  %v947_v39 = vld [vmem:[%s3253_s4 + $0x28] sm:$0xff]  ;;  %v946_v41 = vld [vmem:[%s3253_s4 + $0x20] sm:$0xff]  ;;  %v953_v42 = vld [vmem:[%s3253_s4 + $0x58] sm:$0xff] }
  0x23   : > { %2472 = vmatpush3.msra.mxu0 %v356_v12  ;;  %2483 = vmatpush3.msra.mxu1 %v360_v13  ;;  %v957_v43 = vld [vmem:[%s3253_s4 + $0x78] sm:$0xff]  ;;  %v952_v44 = vld [vmem:[%s3253_s4 + $0x50] sm:$0xff]  ;;  %v951_v46 = vld [vmem:[%s3253_s4 + $0x48] sm:$0xff] }
  0x24   : > { %2473 = vmatprep.subr.mxu0 %v2764_v2  ;;  %2484 = vmatprep.subr.mxu1 %v2764_v2  ;;  %v956_v45 = vld [vmem:[%s3253_s4 + $0x70] sm:$0xff]  ;;  %v955_v47 = vld [vmem:[%s3253_s4 + $0x68] sm:$0xff]  ;;  %v950_v48 = vld [vmem:[%s3253_s4 + $0x40] sm:$0xff] }
  0x25   : > { %2474 = vmatpush3.msra.mxu0 %v355_v14  ;;  %2485 = vmatpush3.msra.mxu1 %v359_v15  ;;  %v954_v49 = vld [vmem:[%s3253_s4 + $0x60] sm:$0xff] }
  0x26   : > { %2475 = vmatprep.subr.mxu0 %v2764_v2  ;;  %2486 = vmatprep.subr.mxu1 %v2764_v2 }
  0x27   : > { %2476 = vmatpush3.msra.mxu0 %v354_v16  ;;  %2477 = vmatprep.mubr.msk.f32.mxu0 %vm2765_vm1, %v2764_v2 }
  0x28   : > { %2487 = vmatpush3.msra.mxu1 %v358_v17  ;;  %2478 = vmatmul.mubr.msk.f32.vlgmr.msra.gmra.mxu0 %vm362_vm0, %v2906_v9 }
  0x29   : > { %2488 = vmatprep.mubr.msk.f32.mxu1 %vm2765_vm1, %v2764_v2  ;;  %2491 = vmatprep.subr.mxu0 %v2764_v2 }
  0x2a   : > { %2502 = vmatprep.subr.mxu1 %v2764_v2  ;;  %2489 = vmatmul.mubr.msk.f32.vlgmr.msra.gmra.mxu1 %vm362_vm0, %v2906_v9 }
  0x2b   : > { %2492 = vmatpush3.msra.mxu0 %v649_v18  ;;  %2503 = vmatpush3.msra.mxu1 %v653_v19 }
  0x2c   : > { %2493 = vmatprep.subr.mxu0 %v2764_v2  ;;  %2504 = vmatprep.subr.mxu1 %v2764_v2 }
  0x2d   : > { %2494 = vmatpush3.msra.mxu0 %v648_v20  ;;  %2505 = vmatpush3.msra.mxu1 %v652_v21 }
  0x2e   : > { %2495 = vmatprep.subr.mxu0 %v2764_v2  ;;  %2506 = vmatprep.subr.mxu1 %v2764_v2 }
  0x2f   : > { %2496 = vmatpush3.msra.mxu0 %v647_v22  ;;  %2507 = vmatpush3.msra.mxu1 %v651_v23 }
  0x30   : > { %2497 = vmatprep.subr.mxu0 %v2764_v2  ;;  %2508 = vmatprep.subr.mxu1 %v2764_v2 }
  0x31   : > { %2498 = vmatpush3.msra.mxu0 %v646_v24  ;;  %2499 = vmatprep.mubr.msk.f32.mxu0 %vm2765_vm1, %v2764_v2 }
  0x32   : > { %2509 = vmatpush3.msra.mxu1 %v650_v25  ;;  %2510 = vmatprep.mubr.msk.f32.mxu1 %vm2765_vm1, %v2764_v2 }
  0x33   : > { %2500 = vmatmul.mubr.msk.f32.vlgmr.msra.gmra.mxu0 %vm362_vm0, %v2906_v9  ;;  %2511 = vmatmul.mubr.msk.f32.vlgmr.msra.gmra.mxu1 %vm362_vm0, %v2906_v9 }
  0x34   : > { %2513 = vmatprep.subr.mxu0 %v2764_v2  ;;  %2524 = vmatprep.subr.mxu1 %v2764_v2 }
  0x35   : > { %2514 = vmatpush3.msra.mxu0 %v657_v26  ;;  %2525 = vmatpush3.msra.mxu1 %v661_v27 }
  0x36   : > { %2515 = vmatprep.subr.mxu0 %v2764_v2  ;;  %2526 = vmatprep.subr.mxu1 %v2764_v2 }
  0x37   : > { %2516 = vmatpush3.msra.mxu0 %v656_v28  ;;  %2527 = vmatpush3.msra.mxu1 %v660_v29 }
  0x38   : > { %2517 = vmatprep.subr.mxu0 %v2764_v2  ;;  %2528 = vmatprep.subr.mxu1 %v2764_v2 }
  0x39   : > { %2518 = vmatpush3.msra.mxu0 %v655_v30  ;;  %2529 = vmatpush3.msra.mxu1 %v659_v31 }
  0x3a   : > { %2519 = vmatprep.subr.mxu0 %v2764_v2  ;;  %2530 = vmatprep.subr.mxu1 %v2764_v2 }
  0x3b   : > { %2520 = vmatpush3.msra.mxu0 %v654_v32  ;;  %2521 = vmatprep.mubr.msk.f32.mxu0 %vm2765_vm1, %v2764_v2 }
  0x3c   : > { %2531 = vmatpush3.msra.mxu1 %v658_v33  ;;  %2532 = vmatprep.mubr.msk.f32.mxu1 %vm2765_vm1, %v2764_v2 }
  0x3d   : > { %2522 = vmatmul.mubr.msk.f32.vlgmr.msra.gmra.mxu0 %vm362_vm0, %v2906_v9  ;;  %2533 = vmatmul.mubr.msk.f32.vlgmr.msra.gmra.mxu1 %vm362_vm0, %v2906_v9 }
  0x3e   : > { %2535 = vmatprep.subr.mxu0 %v2764_v2  ;;  %2546 = vmatprep.subr.mxu1 %v2764_v2 }
  0x3f   : > { %2543 = vmatprep.mubr.msk.f32.mxu0 %vm2765_vm1, %v2764_v2  ;;  %2554 = vmatprep.mubr.msk.f32.mxu1 %vm2765_vm1, %v2764_v2 }
  0x40   : > { %2536 = vmatpush3.msra.mxu0 %v945_v34  ;;  %2547 = vmatpush3.msra.mxu1 %v949_v35 }
  0x41   : > { %2537 = vmatprep.subr.mxu0 %v2764_v2  ;;  %2548 = vmatprep.subr.mxu1 %v2764_v2 }
  0x42   : > { %2538 = vmatpush3.msra.mxu0 %v944_v36  ;;  %2549 = vmatpush3.msra.mxu1 %v948_v37 }
  0x43   : > { %2539 = vmatprep.subr.mxu0 %v2764_v2  ;;  %2550 = vmatprep.subr.mxu1 %v2764_v2 }
  0x44   : > { %2540 = vmatpush3.msra.mxu0 %v943_v38  ;;  %2551 = vmatpush3.msra.mxu1 %v947_v39 }
  0x45   : > { %2541 = vmatprep.subr.mxu0 %v2764_v2  ;;  %2552 = vmatprep.subr.mxu1 %v2764_v2 }
  0x46   : > { %2542 = vmatpush3.msra.mxu0 %v942_v40  ;;  %2553 = vmatpush3.msra.mxu1 %v946_v41 }
  0x47   : > { %2557 = vmatprep.subr.mxu0 %v2764_v2  ;;  %2568 = vmatprep.subr.mxu1 %v2764_v2 }
  0x48   : > { %2544 = vmatmul.mubr.msk.f32.vlgmr.msra.gmra.mxu0 %vm362_vm0, %v2906_v9  ;;  %2555 = vmatmul.mubr.msk.f32.vlgmr.msra.gmra.mxu1 %vm362_vm0, %v2906_v9 }
  0x49   : > { %2565 = vmatprep.mubr.msk.f32.mxu0 %vm2765_vm1, %v2764_v2  ;;  %2576 = vmatprep.mubr.msk.f32.mxu1 %vm2765_vm1, %v2764_v2 }
  0x4a   : > { %2558 = vmatpush3.msra.mxu0 %v953_v42  ;;  %2569 = vmatpush3.msra.mxu1 %v957_v43 }
  0x4b   : > { %2559 = vmatprep.subr.mxu0 %v2764_v2  ;;  %2570 = vmatprep.subr.mxu1 %v2764_v2 }
  0x4c   : > { %2560 = vmatpush3.msra.mxu0 %v952_v44  ;;  %2571 = vmatpush3.msra.mxu1 %v956_v45 }
  0x4d   : > { %2561 = vmatprep.subr.mxu0 %v2764_v2  ;;  %2572 = vmatprep.subr.mxu1 %v2764_v2 }
  0x4e   : > { %2562 = vmatpush3.msra.mxu0 %v951_v46  ;;  %2573 = vmatpush3.msra.mxu1 %v955_v47 }
  0x4f   : > { %2563 = vmatprep.subr.mxu0 %v2764_v2  ;;  %2574 = vmatprep.subr.mxu1 %v2764_v2 }
  0x50   : > { %2564 = vmatpush3.msra.mxu0 %v950_v48  ;;  %2575 = vmatpush3.msra.mxu1 %v954_v49 }
  0x51   : > { %2566 = vmatmul.mubr.msk.f32.vlgmr.msra.gmra.mxu0 %vm362_vm0, %v2906_v9  ;;  %2577 = vmatmul.mubr.msk.f32.vlgmr.msra.gmra.mxu1 %vm362_vm0, %v2906_v9 }
  0x52   : > { %2579 = vmatprep.subr.mxu0 %v2764_v2  ;;  %2584 = vmatprep.subr.mxu1 %v2764_v2 }
  0x53   : > { %2581 = vmatprep.mubr.msk.f32.mxu0 %vm2765_vm1, %v2764_v2  ;;  %2586 = vmatprep.mubr.msk.f32.mxu1 %vm2765_vm1, %v2764_v2 }
  0xde   : > { %v432_v50 = vpop.f32.mrf.mxu0 }
  0xe0   : > { %v2457_v51 = vpop.f32.mrf.mxu0  ;;  %v502_v52 = vpop.f32.mrf.mxu1 }
  0xe2   : > { %v2468_v53 = vpop.f32.mrf.mxu1 }
  0xe8   : > { %v572_v54 = vpop.f32.mrf.mxu0 }
  0xea   : > { %v2479_v55 = vpop.f32.mrf.mxu0  ;;  %v642_v56 = vpop.f32.mrf.mxu1 }
  0xec   : > { %v2490_v57 = vpop.f32.mrf.mxu1 }
  0xed   : > { %v1880_v57 = vld [vmem:[%s3254_s5 + $0x8] sm:$0xff] }
  0xf3   : > { %v728_v58 = vpop.f32.mrf.mxu0  ;;  %v798_v59 = vpop.f32.mrf.mxu1 }
  0xf4   : > { %2580 = vmatpush3.xpose.msk.msra.mxu0 %vm1238_vm2, %v728_v58  ;;  %2585 = vmatpush3.xpose.msk.msra.mxu1 %vm1238_vm2, %v798_v59  ;;  %v2766_v58 = vmov 0   ;;  %v2190_v59 = vld [vmem:[%s344_s26] sm:$0xff] }
  0xf5   : > { %v2501_v60 = vpop.f32.mrf.mxu0  ;;  %v2512_v61 = vpop.f32.mrf.mxu1  ;;  %2589 = vmatprep.subr.mxu0 %v2764_v2  ;;  %2594 = vmatprep.subr.mxu1 %v2764_v2 }
  0xf6   : > { %2681 = vset.pattern.permute.xlu0 %v2766_v58  ;;  %v1881_v60 = vld [vmem:[%s3254_s5 + $0x10] sm:$0xff] }
  0xf7   : > { %2582 = vmatmul.mubr.msk.f32.vlgmr.msra.gmra.mxu0 %vm1238_vm2, %v432_v50  ;;  %2587 = vmatmul.mubr.msk.f32.vlgmr.msra.gmra.mxu1 %vm1238_vm2, %v502_v52 }
  0xf8   : > { %2591 = vmatprep.mubr.msk.f32.mxu0 %vm2765_vm1, %v2764_v2  ;;  %2596 = vmatprep.mubr.msk.f32.mxu1 %vm2765_vm1, %v2764_v2 }
  0xfd   : > { %v868_v62 = vpop.f32.mrf.mxu0  ;;  %v938_v63 = vpop.f32.mrf.mxu1 }
  0xfe   : > { %2590 = vmatpush3.xpose.msk.msra.mxu0 %vm1238_vm2, %v868_v62  ;;  %2595 = vmatpush3.xpose.msk.msra.mxu1 %vm1238_vm2, %v938_v63  ;;  %v1882_v63 = vld [vmem:[%s3254_s5 + $0x18] sm:$0xff] }
  0xff   : > { %v2523_v0 = vpop.f32.mrf.mxu0  ;;  %v2534_v1 = vpop.f32.mrf.mxu1  ;;  %2599 = vmatprep.subr.mxu0 %v2764_v2  ;;  %2604 = vmatprep.subr.mxu1 %v2764_v2 }
 0x101   : > { %2592 = vmatmul.mubr.msk.f32.vlgmr.msra.gmra.mxu0 %vm1238_vm2, %v572_v54  ;;  %2597 = vmatmul.mubr.msk.f32.vlgmr.msra.gmra.mxu1 %vm1238_vm2, %v642_v56  ;;  %v1879_v56 = vld [vmem:[%s3254_s5] sm:$0xff] }
 0x102   : > { %2601 = vmatprep.mubr.msk.f32.mxu0 %vm2765_vm1, %v2764_v2  ;;  %2606 = vmatprep.mubr.msk.f32.mxu1 %vm2765_vm1, %v2764_v2 }
 0x108   : > { %v1024_v3 = vpop.f32.mrf.mxu0  ;;  %v1094_v4 = vpop.f32.mrf.mxu1 }
 0x109   : > { %2600 = vmatpush3.msra.mxu0 %v1024_v3  ;;  %2605 = vmatpush3.msra.mxu1 %v1094_v4 }
 0x10a   : > { %v2545_v5 = vpop.f32.mrf.mxu0  ;;  %v2556_v6 = vpop.f32.mrf.mxu1  ;;  %2609 = vmatprep.subr.mxu0 %v2764_v2  ;;  %2614 = vmatprep.subr.mxu1 %v2764_v2 }
 0x111   : > { %v1164_v7 = vpop.f32.mrf.mxu0  ;;  %v3146_v8 = vpop.f32.mrf.mxu1 }
 0x113   : > { %v2567_v10 = vpop.f32.mrf.mxu0  ;;  %v2578_v11 = vpop.f32.mrf.mxu1 }
 0x1b7   : > { %v1311_v12 = vpop.f32.mrf.mxu0  ;;  %v1387_v13 = vpop.f32.mrf.mxu1 }
 0x1b8   : > { %v1543_v14 = vsel %vm1238_vm2, %v1311_v12, -inf  ;;  %v1546_v17 = vsel %vm1238_vm2, %v1387_v13, -inf }
 0x1b9   : > { %v2588_v15 = vpop.f32.mrf.mxu1  ;;  %1544 = vmax.xlane.f32.xlu0 %v1543_v14  ;;  %v2583_v16 = vpop.f32.mrf.mxu0 }
 0x1bd   : > { %1547 = vmax.xlane.f32.xlu0 %v1546_v17 }
 0x1c1   : > { %v1463_v18 = vpop.f32.mrf.mxu0  ;;  %v1539_v19 = vpop.f32.mrf.mxu1 }
 0x1c2   : > { %v1549_v20 = vsel %vm1238_vm2, %v1463_v18, -inf  ;;  %v1552_v23 = vsel %vm1238_vm2, %v1539_v19, -inf }
 0x1c3   : > { %v2598_v21 = vpop.f32.mrf.mxu1  ;;  %1550 = vmax.xlane.f32.xlu1 %v1549_v20  ;;  %v2593_v22 = vpop.f32.mrf.mxu0  ;;  %v2356_v20 = vld [vmem:[%s3255_s6] ss:$0 sm:$0xff] }
 0x1c7   : > { %1553 = vmax.xlane.f32.xlu1 %v1552_v23 }
 0x242   : > { %v1545_v24 = vpop.xlane.xlu0 %1544 }
 0x243   : > { %v1555_v25 = vsub.f32 %v1311_v12, %v1545_v24 }
 0x245   : > { %v1559_v26 = vmul.f32 1.442695, %v1555_v25 }
 0x246   : > { %v1548_v27 = vpop.xlane.xlu0 %1547 }
 0x247   : > { %2682 = vpow2.f32 %v1559_v26  ;;  %v1556_v28 = vsub.f32 %v1387_v13, %v1548_v27 }
 0x249   : > { %v1561_v29 = vmul.f32 1.442695, %v1556_v28 }
 0x24b   : > { %2684 = vpow2.f32 %v1561_v29 }
 0x24c   : > { %v1551_v30 = vpop.xlane.xlu1 %1550 }
 0x24d   : > { %v1557_v31 = vsub.f32 %v1463_v18, %v1551_v30 }
 0x24f   : > { %v1563_v32 = vmul.f32 1.442695, %v1557_v31 }
 0x250   : > { %v1554_v33 = vpop.xlane.xlu1 %1553 }
 0x251   : > { %2686 = vpow2.f32 %v1563_v32  ;;  %v1558_v34 = vsub.f32 %v1539_v19, %v1554_v33 }
 0x253   : > { %v1565_v35 = vmul.f32 1.442695, %v1558_v34 }
 0x254   : > { %v2683_v36 = vpop.eup %2682 }
 0x255   : > { %2688 = vpow2.f32 %v1565_v35  ;;  %v1567_v37 = vsel %vm1238_vm2, %v2683_v36, 0.0 }
 0x256   : > { %1568 = vadd.xlane.f32.xlu0 %v1567_v37 }
 0x258   : > { %v2685_v38 = vpop.eup %2684 }
 0x259   : > { %v1570_v39 = vsel %vm1238_vm2, %v2685_v38, 0.0 }
 0x25a   : > { %1571 = vadd.xlane.f32.xlu1 %v1570_v39 }
 0x25e   : > { %v2687_v40 = vpop.eup %2686 }
 0x25f   : > { %v1573_v41 = vsel %vm1238_vm2, %v2687_v40, 0.0 }
 0x260   : > { %1574 = vadd.xlane.f32.xlu0 %v1573_v41  ;;  %v2357_v41 = vld [vmem:[%s3256_s7] ss:$0 sm:$0xff] }
 0x262   : > { %v2689_v42 = vpop.eup %2688 }
 0x263   : > { %v1576_v43 = vsel %vm1238_vm2, %v2689_v42, 0.0 }
 0x264   : > { %1577 = vadd.xlane.f32.xlu1 %v1576_v43  ;;  %v2358_v43 = vld [vmem:[%s3257_s8] ss:$0 sm:$0xff] }
 0x276   : > { %2193 = vperm.xlu0 %2681, %v2190_v59  }
 0x2df   : > { %v1569_v44 = vpop.xlane.xlu0 %1568 }
 0x2e0   : > { %2690 = vrcp.f32 %v1569_v44 }
 0x2e3   : > { %v1572_v45 = vpop.xlane.xlu1 %1571 }
 0x2e4   : > { %2692 = vrcp.f32 %v1572_v45 }
 0x2e9   : > { %v1575_v46 = vpop.xlane.xlu0 %1574 }
 0x2ea   : > { %2694 = vrcp.f32 %v1575_v46 }
 0x2ed   : > { %v2691_v47 = vpop.eup %2690  ;;  %v1578_v48 = vpop.xlane.xlu1 %1577 }
 0x2ee   : > { %2696 = vrcp.f32 %v1578_v48  ;;  %v1583_v49 = vmul.f32 %v2691_v47, %v2683_v36 }
 0x2f0   : > { %2602 = vmatmul.mubr.msk.f32.vlgmr.msra.gmra.mxu0 %vm1238_vm2, %v1583_v49 }
 0x2f1   : > { %v2693_v50 = vpop.eup %2692  ;;  %2610 = vmatpush3.msra.mxu0 %v1164_v7  ;;  %2611 = vmatprep.mubr.msk.f32.mxu0 %vm2765_vm1, %v2764_v2  ;;  %v2194_v23 = vpop.permute.xlu0 %2193 }
 0x2f2   : > { %v1584_v51 = vmul.f32 %v2693_v50, %v2685_v38  ;;  %2619 = vmatprep.subr.mxu0 %v2764_v2 }
 0x2f4   : > { %2607 = vmatmul.mubr.msk.f32.vlgmr.msra.gmra.mxu1 %vm1238_vm2, %v1584_v51 }
 0x2f5   : > { %2615 = vmatpush3.msra.mxu1 %v3146_v8  ;;  %2616 = vmatprep.mubr.msk.f32.mxu1 %vm2765_vm1, %v2764_v2 }
 0x2f6   : > { %2624 = vmatprep.subr.mxu1 %v2764_v2 }
 0x2f7   : > { %v2695_v52 = vpop.eup %2694 }
 0x2f8   : > { %v1585_v53 = vmul.f32 %v2695_v52, %v2687_v40 }
 0x2fa   : > { %2612 = vmatmul.mubr.msk.f32.vlgmr.msra.gmra.mxu0 %vm1238_vm2, %v1585_v53 }
 0x2fb   : > { %v2697_v54 = vpop.eup %2696  ;;  %2621 = vmatprep.mubr.msk.f32.mxu0 %vm2765_vm1, %v2764_v2  ;;  %2620 = vmatpush3.msra.mxu0 %v1879_v56 }
 0x2fc   : > { %v1586_v55 = vmul.f32 %v2697_v54, %v2689_v42  ;;  %2629 = vmatprep.subr.mxu0 %v2764_v2 }
 0x2fe   : > { %2617 = vmatmul.mubr.msk.f32.vlgmr.msra.gmra.mxu1 %vm1238_vm2, %v1586_v55 }
 0x2ff   : > { %2626 = vmatprep.mubr.msk.f32.mxu1 %vm2765_vm1, %v2764_v2  ;;  %2625 = vmatpush3.msra.mxu1 %v1880_v57 }
 0x300   : > { %2634 = vmatprep.subr.mxu1 %v2764_v2 }
 0x3b0   : > { %v1656_v61 = vpop.f32.mrf.mxu0 }
 0x3b1   : > { %2622 = vmatmul.mubr.msk.f32.vlgmr.msra.gmra.mxu0 %vm1238_vm2, %v1656_v61 }
 0x3b2   : > { %v2603_v62 = vpop.f32.mrf.mxu0  ;;  %2630 = vmatpush3.msra.mxu0 %v1881_v60  ;;  %2631 = vmatprep.mubr.msk.f32.mxu0 %vm2765_vm1, %v2764_v2 }
 0x3b4   : > { %v1729_v0 = vpop.f32.mrf.mxu1 }
 0x3b5   : > { %2627 = vmatmul.mubr.msk.f32.vlgmr.msra.gmra.mxu1 %vm1238_vm2, %v1729_v0 }
 0x3b6   : > { %v2608_v1 = vpop.f32.mrf.mxu1  ;;  %2635 = vmatpush3.msra.mxu1 %v1882_v63  ;;  %2636 = vmatprep.mubr.msk.f32.mxu1 %vm2765_vm1, %v2764_v2 }
 0x3ba   : > { %v1802_v3 = vpop.f32.mrf.mxu0 }
 0x3bb   : > { %2632 = vmatmul.mubr.msk.f32.vlgmr.msra.gmra.mxu0 %vm1238_vm2, %v1802_v3 }
 0x3bc   : > { %v2613_v4 = vpop.f32.mrf.mxu0 }
 0x3be   : > { %v1875_v5 = vpop.f32.mrf.mxu1 }
 0x3bf   : > { %2637 = vmatmul.mubr.msk.f32.vlgmr.msra.gmra.mxu1 %vm1238_vm2, %v1875_v5 }
 0x3c0   : > { %v2618_v6 = vpop.f32.mrf.mxu1 }
 0x471   : > { %v1952_v7 = vpop.f32.mrf.mxu0 }
 0x472   : > { %v2175_v14 = vsel %vm362_vm0, %v1952_v7, 0.0 }
 0x473   : > { %v2623_v8 = vpop.f32.mrf.mxu0 }
 0x475   : > { %v2025_v10 = vpop.f32.mrf.mxu1 }
 0x476   : > { %v2176_v12 = vsel %vm362_vm0, %v2025_v10, 0.0 }
 0x477   : > { %v2628_v11 = vpop.f32.mrf.mxu1  ;;  %v2177_v2 = vadd.f32 %v2176_v12, %v2175_v14 }
 0x47b   : > { %v2098_v13 = vpop.f32.mrf.mxu0 }
 0x47c   : > { %v2178_v15 = vsel %vm362_vm0, %v2098_v13, 0.0 }
 0x47d   : > { %v2633_v16 = vpop.f32.mrf.mxu0  ;;  %v2179_v17 = vadd.f32 %v2178_v15, %v2177_v2 }
 0x47f   : > { %v2171_v18 = vpop.f32.mrf.mxu1 }
 0x480   : > { %v2180_v19 = vsel %vm362_vm0, %v2171_v18, 0.0 }
 0x481   : > { %v2181_v21 = vadd.f32 %v2180_v19, %v2179_v17  ;;  %v2638_v22 = vpop.f32.mrf.mxu1 }
 0x483   : > { %v2189_v24 = vadd.f32 %v2356_v20, %v2181_v21 }
 0x485   : > { %v2196_v25 = vmul.f32 %v2194_v23, %v2189_v24 }
 0x487   : > { %v2197_v26 = vadd.f32 %v2196_v25, %v2906_v9 }
 0x489   : > { %v2198_v27 = vsel %vm362_vm0, %v2197_v26, 0.0 }
 0x48a   : > { %2199 = vadd.xlane.f32.xlu1 %v2198_v27 }
 0x513   : > { %v2200_v28 = vpop.xlane.xlu1 %2199 }
 0x514   : > { %v2202_v29 = vmul.f32 0.03125, %v2200_v28 }
 0x516   : > { %v2203_v30 = vsub.f32 %v2197_v26, %v2202_v29 }
 0x518   : > { %v2204_v31 = vmul.f32 %v2203_v30, %v2203_v30 }
 0x51a   : > { %v2205_v32 = vsel %vm362_vm0, %v2204_v31, 0.0 }
 0x51b   : > { %2206 = vadd.xlane.f32.xlu1 %v2205_v32 }
 0x5a4   : > { %v2207_v33 = vpop.xlane.xlu1 %2206 }
 0x5a5   : > { %v2208_v34 = vmul.f32 0.032258064, %v2207_v33 }
 0x5a7   : > { %2698 = vrsqrt.f32 %v2208_v34  ;;  %vm2211_vm3 = vcmp.eq.f32.partialorder %v2208_v34, inf  ;;  %v2214_v37 = vand.u32 2147483648, %v2208_v34  ;;  %vm2213_vm4 = vcmp.eq.f32.partialorder %v2208_v34, 0.0 }
 0x5b4   : > { %v2699_v35 = vpop.eup %2698 }
 0x5b5   : > { %v2210_v36 = vmul.f32 %v2699_v35, %v2208_v34 }
 0x5b7   : > { %v2212_v9 = vsel %vm2211_vm3, %v2208_v34, %v2210_v36 }
 0x5b8   : > { %v2215_v38 = vsel %vm2213_vm4, %v2214_v37, %v2212_v9 }
 0x5b9   : > { %v2216_v39 = vadd.f32 0.001, %v2215_v38 }
 0x5bb   : > { %2700 = vrcp.f32 %v2216_v39 }
 0x5c8   : > { %v2701_v40 = vpop.eup %2700 }
 0x5c9   : > { %v2218_v42 = vmul.f32 %v2701_v40, %v2203_v30 }
 0x5cb   : > { %v2226_v44 = vmul.f32 %v2357_v41, %v2218_v42 }
 0x5cd   : > { %v2234_v45 = vadd.f32 %v2358_v43, %v2226_v44 }
 0x5cf   : > { %2235 = vst.msk [vmem:[%s336_s28] sm:$0xff] %vm362_vm0, %v2234_v45 }
 0x5d0   : > { %2715 = shalt.err (!%p2712_p3)
}
 0x5d1   : > { %s2716_s21 = scalar_lea.hbm %s2248_s16, 128  ;;  %s2720_s27 = scalar_lea.hbm %s3258_s9, 256 }
 0x5d2   : > { %p2717_p4 = scmp.ne.s32.totalorder %s2248_s16, %s2716_s21  ;;  %p2721_p9 = scmp.lt.s32.totalorder %s2248_s16, %s3258_s9 }
 0x5d3   : > { %p2722_p10 = scmp.lt.s32.totalorder %s2720_s27, %s2716_s21 }
 0x5d4   : > { %p2718_p7 = pnand %p2717_p4, %p2856_p5 }
 0x5d5   : > { %p2723_p11 = por %p2722_p10, %p2721_p9 }
 0x5d6   : > { %p2719_p8 = pneg %p2718_p7 }
 0x5d8   : > { %p2724_p12 = pnand %p2723_p11, %p2719_p8 }
 0x5da   : > { %2727 = shalt.err (!%p2724_p12)
}
 0x5db   : > { %2639 = dma.vmem_to_hbm [thread:$0]  (%p2856_p5), %s2251_s29, 128, %s2248_s16, %s2237_s0  }
 0x5dc PF: > { %p2645_p13 = scmp.ge.s32.totalorder %s2762_s12, 2  ;;  %s2262_s22 = sand.u32 1, %s2750_s30  }
 0x5dd   : > { %s2263_s23 = scalar_lea.sflag [#allocation3], %s2262_s22 }
 0x5de   : > { %p2642_p0 = pnand %p2645_p13, %p2860_p6 }
 0x5e0   : > { %p2643_p1 = pneg %p2642_p0 }
 0x5e2   : > { %2745 = dma.done.wait (%p2643_p1), %s2263_s23, 128  }
 0x5e3   : > { %2747 = vsyncadd (%p2643_p1), %s2263_s23, 4294967168  ;;  %p19_p2 = scmp.ge.s32.totalorder %s2843_s15, 4   ;;  %s3263_s30 = smov %s2754_s10 }
 0x5e4   : > { %s3264_s10 = smov %s2758_s11  ;;  %s3265_s11 = smov %s2854_s18 }
 0x5e5   : > { %s3266_s12 = smov %s2843_s15  ;;  %21 = sbr.rel (!%p19_p2) target bundleno = 5 (0x5), region = 94 }
 0x5ea   :  { %2268 = vsyncpa [#allocation3], 1 }
 0x5eb   :  { %2270 = vsyncpa [#allocation3 + $0x1], 1 }

</bundles_post_ra>
